<compile_context>
chip_gen: v5e
topology: v5e:2x2
jax: 0.10.0
libtpu: 0.0.40
codegen_flags: <defaults>
</compile_context>

<pallas_src>
import jax
import jax.numpy as jnp
from jax import lax
from jax.experimental import pallas as pl
from jax.experimental.pallas import tpu as pltpu

HID = 100            # hidden width fixed by the module definition
HIDP = 128           # lane-padded hidden width used inside the kernel
_VMEM_BUDGET = 40 * 2**20     # per-core working-set target (fits v7x's 64 MiB VMEM)
_VMEM_LIMIT = 64 * 2**20      # scoped-VMEM limit requested from Mosaic


def _round_up(n, m):
    return ((n + m - 1) // m) * m


def _elu(z):
    # ELU with alpha=1.0 (PyTorch default): z if z > 0 else exp(z) - 1.
    return jnp.where(z > 0, z, jnp.exp(z) - 1.0)


def tclassifier_kernel(x_ref, w1_ref, b1_ref, w2_ref, b2_ref, w3_ref, b3_ref, out_ref):
    cdt = w1_ref.dtype                      # MXU operand dtype (f32 or bf16)
    x = x_ref[...]
    if x.dtype != cdt:
        x = x.astype(cdt)                   # in-kernel cast: no extra HBM pass over x

    # Layer 1: (TB, D) @ (D, 128) on the MXU, f32 accumulation. Padded out-lanes
    # of W1/b1 are 0, so h's padded lanes are ELU(0) = 0.
    h = jnp.dot(x, w1_ref[...], preferred_element_type=jnp.float32) + b1_ref[...]
    h = _elu(h)
    if cdt != jnp.float32:
        h = h.astype(cdt)                   # keep layer 2 on the native-bf16 MXU path

    # Layer 2: (TB, 128) @ (128, 128).
    h = jnp.dot(h, w2_ref[...], preferred_element_type=jnp.float32) + b2_ref[...]
    h = _elu(h)                             # padded lanes stay exactly 0

    # Head Linear(100 -> 1), computed transposed so the result is lane-dense:
    # (8, 128) @ (TB, 128)^T -> (8, TB); every row is identical, keep row 0.
    logits = lax.dot_general(
        w3_ref[...], h, (((1,), (1,)), ((), ())),
        preferred_element_type=jnp.float32)[0:1, :]
    z = logits + b3_ref[0, 0]               # scalar bias from SMEM
    # Sigmoid: exp(-z) may overflow to inf for very negative z -> result 0.0, no NaN.
    out_ref[...] = 1.0 / (1.0 + jnp.exp(-z))


def _prepare_params(params, compute_dtype):
    """Zero-pad hidden width 100 -> 128 and cast the MXU weights (tiny, one-time)."""
    w1, b1, w2, b2, w3, b3 = params
    D = w1.shape[0]
    w1p = jnp.zeros((D, HIDP), jnp.float32).at[:, :HID].set(w1).astype(compute_dtype)
    b1p = jnp.zeros((1, HIDP), jnp.float32).at[:, :HID].set(b1)
    w2p = jnp.zeros((HIDP, HIDP), jnp.float32).at[:HID, :HID].set(w2).astype(compute_dtype)
    b2p = jnp.zeros((1, HIDP), jnp.float32).at[:, :HID].set(b2)
    w3p = jnp.zeros((1, HIDP), jnp.float32).at[:, :HID].set(w3)
    w3p = jnp.broadcast_to(w3p, (8, HIDP))          # 8 sublanes for the head matmul
    b3p = jnp.asarray(b3, jnp.float32).reshape(1, 1)
    return w1p, b1p, w2p, b2p, w3p, b3p


def _select_batch_tile(B, D, x_itemsize, c_itemsize, tb_max):
    """Pick TB from a VMEM budget using lane-padded widths (not nominal D)."""
    if B <= 128:
        return B                       # single block; block dims == full array dims
    Dp = _round_up(D, 128)             # lanes an x row actually occupies in VMEM
    # Resident weights (assume double-buffering even with a constant index_map).
    weight_bytes = 2 * ((Dp * HIDP + HIDP * HIDP + 8 * HIDP) * c_itemsize + 3 * HIDP * 4)
    budget = max(_VMEM_BUDGET - weight_bytes, 4 * 2**20)
    # Per-batch-row bytes: double-buffered x tile + in-kernel cast copy
    # + f32 activations / MXU results / epilogue temps + lane-dense out tile.
    per_row = 2 * Dp * x_itemsize + Dp * c_itemsize + 6 * HIDP * 4 + 2 * 8 * 4
    tb = budget // per_row
    # Keep >= 2 grid steps so the "parallel" axis can use both v7x TensorCores.
    tb = min(tb, tb_max, _round_up(-(-B // 2), 128))
    return int(max(128, (tb // 128) * 128))


def tclassifier_forward(x, params, *, tb_max=4096, compute_dtype=jnp.float32):
    """x: (B, input_dim). params: (w1, b1, w2, b2, w3, b3) with weights stored
    (in, out), biases (1, out), w3 as the (1, 100) head row, b3 as (1, 1).
    compute_dtype: dtype of the MXU operands for layers 1 and 2 (f32 or bf16)."""
    B, D = x.shape
    w1p, b1p, w2p, b2p, w3p, b3p = _prepare_params(params, compute_dtype)

    TB = _select_batch_tile(B, D, x.dtype.itemsize, jnp.dtype(compute_dtype).itemsize,
                            tb_max)
    grid = (pl.cdiv(B, TB),)            # ragged grid: partial last block is masked
    const = lambda i: (0, 0)            # weights/biases resident in VMEM across steps

    cost = pl.CostEstimate(
        flops=2 * B * (D * HIDP + HIDP * HIDP + HIDP),
        transcendentals=B * (2 * HIDP + 1),
        bytes_accessed=(B * D * x.dtype.itemsize
                        + w1p.size * w1p.dtype.itemsize
                        + w2p.size * w2p.dtype.itemsize
                        + (b1p.size + b2p.size + w3p.size + b3p.size) * 4
                        + B * 4),
    )

    out = pl.pallas_call(
        tclassifier_kernel,
        out_shape=jax.ShapeDtypeStruct((1, B), jnp.float32),     # lane-dense output
        grid=grid,
        in_specs=[
            pl.BlockSpec((TB, D), lambda i: (i, 0)),             # x: tiled over batch
            pl.BlockSpec((D, HIDP), const),                      # W1 (in, 128)
            pl.BlockSpec((1, HIDP), const),                      # b1
            pl.BlockSpec((HIDP, HIDP), const),                   # W2 (128, 128)
            pl.BlockSpec((1, HIDP), const),                      # b2
            pl.BlockSpec((8, HIDP), const),                      # W3 rows (8, 128)
            pl.BlockSpec(memory_space=pltpu.MemorySpace.SMEM),   # b3 scalar in SMEM
        ],
        out_specs=pl.BlockSpec((1, TB), lambda i: (0, i)),
        compiler_params=pltpu.CompilerParams(
            dimension_semantics=("parallel",),
            vmem_limit_bytes=_VMEM_LIMIT,
        ),
        cost_estimate=cost,
    )(x, w1p, b1p, w2p, b2p, w3p, b3p)

    return out.reshape(B, 1)


def init_params(key, input_dim):
    """PyTorch nn.Linear default init (uniform +-1/sqrt(fan_in)). Weights stored
    transposed as (in, out); biases as (1, out); W3 stored as a (1, 100) row."""
    layer_dims = [(input_dim, HID), (HID, HID), (HID, 1)]
    keys = jax.random.split(key, 2 * len(layer_dims))
    raw = []
    for i, (din, dout) in enumerate(layer_dims):
        bound = 1.0 / float(din) ** 0.5
        w = jax.random.uniform(keys[2 * i], (din, dout), jnp.float32, -bound, bound)
        b = jax.random.uniform(keys[2 * i + 1], (1, dout), jnp.float32, -bound, bound)
        raw.append((w, b))
    (w1, b1), (w2, b2), (w3, b3) = raw
    return (w1, b1, w2, b2, w3.T, b3)        # w3 -> (1, 100), b3 -> (1, 1)


def reference_forward(x, params):
    """Pure-JAX reference (eval mode: dropout is identity)."""
    w1, b1, w2, b2, w3, b3 = params
    hp = lax.Precision.HIGHEST
    elu = lambda z: jnp.where(z > 0, z, jnp.expm1(z))
    h = elu(jnp.dot(x, w1, precision=hp) + b1)
    h = elu(jnp.dot(h, w2, precision=hp) + b2)
    logits = jnp.dot(h, w3.T, precision=hp) + b3
    return jax.nn.sigmoid(logits)


if __name__ == "__main__":
    key = jax.random.PRNGKey(0)
    input_dim = 16                       # regularization (dropout p) is identity in eval
    k_x, k_x2, k_p = jax.random.split(key, 3)
    params = init_params(k_p, input_dim)

    # Single-block case (batch=8): block dims equal the full array dims.
    x = jax.random.normal(k_x, (8, input_dim), jnp.float32)
    out = jax.block_until_ready(tclassifier_forward(x, params))
    ref = reference_forward(x, params)
    assert out.shape == (8, 1), out.shape
    assert jnp.allclose(out, ref, atol=5e-5, rtol=5e-5), float(jnp.abs(out - ref).max())

    # Multi-block ragged case (batch=300 -> grid of 2 with a masked partial tile).
    x2 = jax.random.normal(k_x2, (300, input_dim), jnp.float32)
    out2 = jax.block_until_ready(tclassifier_forward(x2, params))
    ref2 = reference_forward(x2, params)
    assert out2.shape == (300, 1), out2.shape
    assert jnp.allclose(out2, ref2, atol=5e-5, rtol=5e-5), float(jnp.abs(out2 - ref2).max())

    # bf16 MXU-operand path (v6e/v7x fast path): loose-tolerance sanity check.
    out_bf16 = jax.block_until_ready(
        tclassifier_forward(x2, params, compute_dtype=jnp.bfloat16))
    assert jnp.allclose(out_bf16, ref2, atol=5e-2), float(jnp.abs(out_bf16 - ref2).max())

    print("KERNEL_OK")
</pallas_src>

<mosaic_0001>
module attributes {stable_mosaic.version = 11 : i64} {
  func.func @tclassifier_kernel(%arg0: i32, %arg1: memref<8x16xf32, #tpu.memory_space<vmem>>, %arg2: memref<16x128xf32, #tpu.memory_space<vmem>>, %arg3: memref<1x128xf32, #tpu.memory_space<vmem>>, %arg4: memref<128x128xf32, #tpu.memory_space<vmem>>, %arg5: memref<1x128xf32, #tpu.memory_space<vmem>>, %arg6: memref<8x128xf32, #tpu.memory_space<vmem>>, %arg7: memref<1x1xf32, #tpu.memory_space<smem>>, %arg8: memref<1x8xf32, #tpu.memory_space<vmem>>) attributes {dimension_semantics = [#tpu.dimension_semantics<parallel>], iteration_bounds = array<i64: 1>, scalar_prefetch = 0 : i64, scratch_operands = 0 : i64, tpu.core_type = #tpu.core_type<tc>, window_params = [{transform_indices = @transform_0, window_bounds = array<i64: 8, 16>}, {pipeline_mode = #tpu.pipeline_mode<synchronous>, transform_indices = @transform_1, window_bounds = array<i64: 16, 128>}, {pipeline_mode = #tpu.pipeline_mode<synchronous>, transform_indices = @transform_2, window_bounds = array<i64: 1, 128>}, {pipeline_mode = #tpu.pipeline_mode<synchronous>, transform_indices = @transform_3, window_bounds = array<i64: 128, 128>}, {pipeline_mode = #tpu.pipeline_mode<synchronous>, transform_indices = @transform_4, window_bounds = array<i64: 1, 128>}, {pipeline_mode = #tpu.pipeline_mode<synchronous>, transform_indices = @transform_5, window_bounds = array<i64: 8, 128>}, {transform_indices = @transform_6, window_bounds = array<i64: 1, 1>}, {transform_indices = @transform_7, window_bounds = array<i64: 1, 8>}]} {
    %c0 = arith.constant 0 : index
    %c0_0 = arith.constant 0 : index
    %0 = vector.load %arg1[%c0, %c0_0] : memref<8x16xf32, #tpu.memory_space<vmem>>, vector<8x16xf32>
    %c0_1 = arith.constant 0 : index
    %c0_2 = arith.constant 0 : index
    %1 = vector.load %arg2[%c0_1, %c0_2] : memref<16x128xf32, #tpu.memory_space<vmem>>, vector<16x128xf32>
    %cst = arith.constant dense<0.000000e+00> : vector<8x128xf32>
    %2 = tpu.matmul %0, %1, %cst {dimension_numbers = #tpu.dot_dimension_numbers<[1], [0], [0], [1], [0, 0, 1, 1], [], []>} : vector<8x16xf32>, vector<16x128xf32>, vector<8x128xf32> -> vector<8x128xf32>
    %c0_3 = arith.constant 0 : index
    %c0_4 = arith.constant 0 : index
    %3 = vector.load %arg3[%c0_3, %c0_4] : memref<1x128xf32, #tpu.memory_space<vmem>>, vector<1x128xf32>
    %4 = vector.broadcast %3 : vector<1x128xf32> to vector<8x128xf32>
    %5 = arith.addf %2, %4 : vector<8x128xf32>
    %cst_5 = arith.constant 0.000000e+00 : f32
    %6 = vector.broadcast %cst_5 : f32 to vector<8x128xf32>
    %7 = arith.cmpf ogt, %5, %6 : vector<8x128xf32>
    %8 = math.exp %5 : vector<8x128xf32>
    %cst_6 = arith.constant 1.000000e+00 : f32
    %9 = vector.broadcast %cst_6 : f32 to vector<8x128xf32>
    %10 = arith.subf %8, %9 : vector<8x128xf32>
    %11 = arith.select %7, %5, %10 : vector<8x128xi1>, vector<8x128xf32>
    %c0_7 = arith.constant 0 : index
    %c0_8 = arith.constant 0 : index
    %12 = vector.load %arg4[%c0_7, %c0_8] : memref<128x128xf32, #tpu.memory_space<vmem>>, vector<128x128xf32>
    %cst_9 = arith.constant dense<0.000000e+00> : vector<8x128xf32>
    %13 = tpu.matmul %11, %12, %cst_9 {dimension_numbers = #tpu.dot_dimension_numbers<[1], [0], [0], [1], [0, 0, 1, 1], [], []>} : vector<8x128xf32>, vector<128x128xf32>, vector<8x128xf32> -> vector<8x128xf32>
    %c0_10 = arith.constant 0 : index
    %c0_11 = arith.constant 0 : index
    %14 = vector.load %arg5[%c0_10, %c0_11] : memref<1x128xf32, #tpu.memory_space<vmem>>, vector<1x128xf32>
    %15 = vector.broadcast %14 : vector<1x128xf32> to vector<8x128xf32>
    %16 = arith.addf %13, %15 : vector<8x128xf32>
    %cst_12 = arith.constant 0.000000e+00 : f32
    %17 = vector.broadcast %cst_12 : f32 to vector<8x128xf32>
    %18 = arith.cmpf ogt, %16, %17 : vector<8x128xf32>
    %19 = math.exp %16 : vector<8x128xf32>
    %cst_13 = arith.constant 1.000000e+00 : f32
    %20 = vector.broadcast %cst_13 : f32 to vector<8x128xf32>
    %21 = arith.subf %19, %20 : vector<8x128xf32>
    %22 = arith.select %18, %16, %21 : vector<8x128xi1>, vector<8x128xf32>
    %c0_14 = arith.constant 0 : index
    %c0_15 = arith.constant 0 : index
    %23 = vector.load %arg6[%c0_14, %c0_15] : memref<8x128xf32, #tpu.memory_space<vmem>>, vector<8x128xf32>
    %cst_16 = arith.constant dense<0.000000e+00> : vector<8x8xf32>
    %24 = tpu.matmul %23, %22, %cst_16 {dimension_numbers = #tpu.dot_dimension_numbers<[1], [1], [0], [0], [0, 0, 1, 0], [], []>} : vector<8x128xf32>, vector<8x128xf32>, vector<8x8xf32> -> vector<8x8xf32>
    %25 = vector.extract_strided_slice %24 {offsets = [0, 0], sizes = [1, 8], strides = [1, 1]} : vector<8x8xf32> to vector<1x8xf32>
    %c0_17 = arith.constant 0 : index
    %c0_18 = arith.constant 0 : index
    %26 = memref.load %arg7[%c0_17, %c0_18] : memref<1x1xf32, #tpu.memory_space<smem>>
    %27 = vector.broadcast %26 : f32 to vector<1x8xf32>
    %28 = arith.addf %25, %27 : vector<1x8xf32>
    %cst_19 = arith.constant 0.000000e+00 : f32
    %29 = vector.broadcast %cst_19 : f32 to vector<1x8xf32>
    %30 = arith.subf %29, %28 : vector<1x8xf32>
    %31 = math.exp %30 : vector<1x8xf32>
    %cst_20 = arith.constant 1.000000e+00 : f32
    %32 = vector.broadcast %cst_20 : f32 to vector<1x8xf32>
    %33 = arith.addf %32, %31 : vector<1x8xf32>
    %cst_21 = arith.constant 1.000000e+00 : f32
    %34 = vector.broadcast %cst_21 : f32 to vector<1x8xf32>
    %35 = arith.divf %34, %33 : vector<1x8xf32>
    %c0_22 = arith.constant 0 : index
    %c0_23 = arith.constant 0 : index
    %36 = vector.load %arg8[%c0_22, %c0_23] : memref<1x8xf32, #tpu.memory_space<vmem>>, vector<1x8xf32>
    tpu.vector_store %arg8[%c0_22, %c0_23], %35 {strides = array<i32>} : memref<1x8xf32, #tpu.memory_space<vmem>>, vector<1x8xf32>,
    return
  }
  func.func @transform_0(%arg0: i32) -> (i32, i32) {
    %c0_i32 = arith.constant 0 : i32
    %c0_i32_0 = arith.constant 0 : i32
    return %arg0, %c0_i32 : i32, i32
  }
  func.func @transform_1(%arg0: i32) -> (i32, i32) {
    %c0_i32 = arith.constant 0 : i32
    %c0_i32_0 = arith.constant 0 : i32
    %c0_i32_1 = arith.constant 0 : i32
    return %c0_i32, %c0_i32_0 : i32, i32
  }
  func.func @transform_2(%arg0: i32) -> (i32, i32) {
    %c0_i32 = arith.constant 0 : i32
    %c0_i32_0 = arith.constant 0 : i32
    %c0_i32_1 = arith.constant 0 : i32
    return %c0_i32, %c0_i32_0 : i32, i32
  }
  func.func @transform_3(%arg0: i32) -> (i32, i32) {
    %c0_i32 = arith.constant 0 : i32
    %c0_i32_0 = arith.constant 0 : i32
    %c0_i32_1 = arith.constant 0 : i32
    return %c0_i32, %c0_i32_0 : i32, i32
  }
  func.func @transform_4(%arg0: i32) -> (i32, i32) {
    %c0_i32 = arith.constant 0 : i32
    %c0_i32_0 = arith.constant 0 : i32
    %c0_i32_1 = arith.constant 0 : i32
    return %c0_i32, %c0_i32_0 : i32, i32
  }
  func.func @transform_5(%arg0: i32) -> (i32, i32) {
    %c0_i32 = arith.constant 0 : i32
    %c0_i32_0 = arith.constant 0 : i32
    %c0_i32_1 = arith.constant 0 : i32
    return %c0_i32, %c0_i32_0 : i32, i32
  }
  func.func @transform_6(%arg0: i32) -> (i32, i32) {
    %c0_i32 = arith.constant 0 : i32
    %c0_i32_0 = arith.constant 0 : i32
    %c0_i32_1 = arith.constant 0 : i32
    return %c0_i32, %c0_i32_0 : i32, i32
  }
  func.func @transform_7(%arg0: i32) -> (i32, i32) {
    %c0_i32 = arith.constant 0 : i32
    %c0_i32_0 = arith.constant 0 : i32
    return %c0_i32, %arg0 : i32, i32
  }
}

</mosaic_0001>

<bundles_post_ra>
// kernel: tpu_custom_call.1
= control target key start
LH: loop header
LB: loop body
LE: loop exit
PB: predicated region body
PF: predicated region fallthrough
CT: control target
= control target key end

     0   :  { %13 = vsyncpa [#allocation4], 0  ;;  %s451_s0 = inlined_call_operand.hbm [shape: f32[8,16], index: 0, kind: input, shape index: {}]   ;;  %s452_s1 = inlined_call_operand.hbm [shape: f32[16,128], index: 1, kind: input, shape index: {}]   ;;  %s453_s2 = inlined_call_operand.vmem [shape: f32[1,128], index: 2, kind: input, shape index: {}]   ;;  %s454_s3 = inlined_call_operand.hbm [shape: f32[128,128], index: 3, kind: input, shape index: {}]   ;;  %s455_s4 = inlined_call_operand.vmem [shape: f32[1,128], index: 4, kind: input, shape index: {}]   ;;  %s456_s5 = inlined_call_operand.hbm [shape: f32[8,128], index: 5, kind: input, shape index: {}]   ;;  %s457_s6 = inlined_call_operand.<no memory space> [shape: f32[1,1], index: 6, kind: input, shape index: {}]   ;;  %s458_s7 = inlined_call_operand.hbm [shape: f32[1,8], index: 7, kind: output, shape index: {}]  }
   0x1   :  { %14 = vsyncpa [#allocation7], 0 }
   0x2   :  { %15 = vsyncpa [#allocation10], 0  ;;  %s32_s26 = sshll.u32 %s452_s1, 4  ;;  %s33_s26 = int_to_ptr.hbm [resolvable:$true] %s32_s26 }
   0x3   :  { %16 = vsyncpa [#allocation5], 0  ;;  %s380_s27 = smov [#allocation6]   ;;  %s22_s8 = sshll.u32 %s451_s0, 4  ;;  %s23_s8 = int_to_ptr.hbm [resolvable:$true] %s22_s8 }
   0x4   :  { %s34_s28 = sshll.u32 %s380_s27, 4  ;;  %s381_s9 = smov 128   ;;  %s35_s28 = int_to_ptr.vmem [resolvable:$true] %s34_s28 }
   0x5   :  { %s382_s10 = smov 8   ;;  %s383_s11 = smov [#allocation3]  }
   0x6   :  { %40 = dma.hbm_to_vmem [thread:$0]  %s33_s26, 256, %s35_s28, [#allocation7], %s381_s9, %s381_s9, %s382_s10  }
   0x7   :  { %s24_s12 = sshll.u32 %s383_s11, 4  ;;  %s47_s15 = sshll.u32 %s454_s3, 4  ;;  %s25_s12 = int_to_ptr.vmem [resolvable:$true] %s24_s12  ;;  %s48_s15 = int_to_ptr.hbm [resolvable:$true] %s47_s15 }
   0x8   :  { %27 = dma.hbm_to_vmem [thread:$0]  %s23_s8, 128, %s25_s12, [#allocation4]  }
   0x9   :  { %s63_s17 = sshll.u32 %s456_s5, 4  ;;  %s384_s18 = smov [#allocation8]   ;;  %s64_s17 = int_to_ptr.hbm [resolvable:$true] %s63_s17 }
   0xa   :  { %s49_s19 = sshll.u32 %s384_s18, 4  ;;  %s385_s0 = smov [#allocation9]   ;;  %s50_s19 = int_to_ptr.vmem [resolvable:$true] %s49_s19 }
   0xb   :  { %55 = dma.hbm_to_vmem [thread:$0]  %s48_s15, 2048, %s50_s19, [#allocation7], %s381_s9, %s381_s9, %s382_s10  }
   0xc   :  { %s65_s20 = sshll.u32 %s385_s0, 4  ;;  %s66_s20 = int_to_ptr.vmem [resolvable:$true] %s65_s20 }
   0xd   :  { %68 = dma.hbm_to_vmem [thread:$0]  %s64_s17, 128, %s66_s20, [#allocation10]  }
   0xe   :  { %372 = dma.done.wait [#allocation4], 128  }
   0xf   :  { %373 = vsyncadd [#allocation4], 4294967168 }
  0x10   :  { %374 = dma.done.wait [#allocation7], 2304  }
  0x11   :  { %375 = vsyncadd [#allocation7], 4294964992 }
  0x12   :  { %376 = dma.done.wait [#allocation10], 128  }
  0x13   :  { %377 = vsyncadd [#allocation10], 4294967168  ;;  %v89_v0 = vld [vmem:[#allocation6 + $0x8] sm:$0xff]  ;;  %v88_v1 = vld [vmem:[#allocation6] sm:$0xff]  ;;  %vm94_vm0 = vcmask 130048   ;;  %v190_v34 = vstv %s457_s6  ;;  %s220_s6 = sshll.u32 %s458_s7, 4  ;;  %s221_s6 = int_to_ptr.hbm [resolvable:$true] %s220_s6 }
  0x14   :  { %112 = vmatpush.msra.mxu0 %v89_v0  ;;  %v87_v2 = vld [vmem:[#allocation3] sm:$0xff]  ;;  %v138_v3 = vld [vmem:[#allocation8 + $0x78] sm:$0xff]  ;;  %v137_v4 = vld [vmem:[#allocation8 + $0x70] sm:$0xff]  ;;  %vm211_vm6 = vcmask 57344  }
  0x15   :  { %143 = vmatpush.msra.mxu1 %v138_v3  ;;  %v136_v5 = vld [vmem:[#allocation8 + $0x68] sm:$0xff]  ;;  %v135_v6 = vld [vmem:[#allocation8 + $0x60] sm:$0xff]  ;;  %v134_v7 = vld [vmem:[#allocation8 + $0x58] sm:$0xff] }
  0x16   :  { %113 = vmatpush.msra.mxu0 %v88_v1  ;;  %v133_v8 = vld [vmem:[#allocation8 + $0x50] sm:$0xff]  ;;  %v132_v9 = vld [vmem:[#allocation8 + $0x48] sm:$0xff]  ;;  %v131_v10 = vld [vmem:[#allocation8 + $0x40] sm:$0xff] }
  0x17   :  { %232 = vmatmul.msk.f32.vlgmr.msra.gmra.mxu0 %vm94_vm0, %v87_v2  ;;  %144 = vmatpush.msra.mxu1 %v137_v4  ;;  %v130_v11 = vld [vmem:[#allocation8 + $0x38] sm:$0xff]  ;;  %v129_v12 = vld [vmem:[#allocation8 + $0x30] sm:$0xff]  ;;  %v128_v13 = vld [vmem:[#allocation8 + $0x28] sm:$0xff] }
  0x18   :  { %v127_v14 = vld [vmem:[#allocation8 + $0x20] sm:$0xff]  ;;  %v126_v15 = vld [vmem:[#allocation8 + $0x18] sm:$0xff]  ;;  %v125_v16 = vld [vmem:[#allocation8 + $0x10] sm:$0xff] }
  0x19   :  { %145 = vmatpush.msra.mxu1 %v136_v5  ;;  %v124_v17 = vld [vmem:[#allocation8 + $0x8] sm:$0xff]  ;;  %v123_v18 = vld [vmem:[#allocation8] sm:$0xff] }
  0x1a   :  { %v242_v19 = vld [vmem:[%s453_s2] ss:$0 sm:$0xff]  ;;  %v168_v33 = vld [vmem:[#allocation9] sm:$0xff] }
  0x1b   :  { %146 = vmatpush.msra.mxu1 %v135_v6  ;;  %v243_v26 = vld [vmem:[%s455_s4] ss:$0 sm:$0xff]  ;;  %s386_s4 = smov [#allocation11]  }
  0x1c   :  { %s218_s24 = sshll.u32 %s386_s4, 4  ;;  %s219_s24 = int_to_ptr.vmem [resolvable:$true] %s218_s24 }
  0x1d   :  { %147 = vmatpush.msra.mxu1 %v134_v7 }
  0x1f   :  { %148 = vmatpush.msra.mxu1 %v133_v8 }
  0x21   :  { %149 = vmatpush.msra.mxu1 %v132_v9 }
  0x23   :  { %150 = vmatpush.msra.mxu1 %v131_v10 }
  0x25   :  { %151 = vmatpush.msra.mxu1 %v130_v11 }
  0x27   :  { %152 = vmatpush.msra.mxu1 %v129_v12 }
  0x29   :  { %153 = vmatpush.msra.mxu1 %v128_v13 }
  0x2b   :  { %154 = vmatpush.msra.mxu1 %v127_v14 }
  0x2d   :  { %155 = vmatpush.msra.mxu1 %v126_v15 }
  0x2f   :  { %156 = vmatpush.msra.mxu1 %v125_v16 }
  0x31   :  { %157 = vmatpush.msra.mxu1 %v124_v17 }
  0x33   :  { %158 = vmatpush.msra.mxu1 %v123_v18 }
  0x94   :  { %v115_v20 = vpop.f32.mrf.mxu0 }
  0x95   :  { %v116_v21 = vadd.f32 %v242_v19, %v115_v20 }
  0x97   :  { %v119_v22 = vmul.f32 1.442695, %v116_v21  ;;  %vm118_vm1 = vcmp.gt.f32.partialorder %v116_v21, 0.0 }
  0x99   :  { %244 = vpow2.f32 %v119_v22 }
  0x9f   :  { %v245_v23 = vpop.eup %244 }
  0xa0   :  { %v233_v24 = vadd.f32 -1.0, %v245_v23 }
  0xa2   :  { %v122_v25 = vsel %vm118_vm1, %v116_v21, %v233_v24 }
  0xa3   :  { %159 = vmatmul.f32.vlgmr.msra.gmra.mxu1 %v122_v25 }
 0x120   :  { %v160_v27 = vpop.f32.mrf.mxu1 }
 0x121   :  { %v161_v28 = vadd.f32 %v243_v26, %v160_v27 }
 0x123   :  { %v164_v29 = vmul.f32 1.442695, %v161_v28  ;;  %vm163_vm2 = vcmp.gt.f32.partialorder %v161_v28, 0.0 }
 0x125   :  { %246 = vpow2.f32 %v164_v29 }
 0x12b   :  { %v247_v30 = vpop.eup %246 }
 0x12c   :  { %v234_v31 = vadd.f32 -1.0, %v247_v30 }
 0x12e   :  { %v167_v32 = vsel %vm163_vm2, %v161_v28, %v234_v31 }
 0x12f   :  { %184 = vmatpush.xpose.msra.mxu2 %v167_v32 }
 0x132   :  { %185 = vmatmul.f32.vlgmr.msra.gmra.mxu2 %v168_v33 }
 0x1b5   :  { %v186_v35 = vpop.f32.mrf.mxu2 }
 0x1b6   :  { %v191_v36 = vadd.f32 %v190_v34, %v186_v35 }
 0x1b8   :  { %v192_v37 = vsub.f32 0.0, %v191_v36 }
 0x1ba   :  { %v193_v38 = vmul.f32 1.442695, %v192_v37 }
 0x1bc   :  { %248 = vpow2.f32 %v193_v38 }
 0x1c2   :  { %v249_v39 = vpop.eup %248 }
 0x1c3   :  { %v195_v40 = vadd.f32 1.0, %v249_v39 }
 0x1c5   :  { %250 = vrcp.f32 %v195_v40  ;;  %v207_v44 = vand.u32 2147483648, %v195_v40  ;;  %v205_v46 = vand.u32 2147483647, %v195_v40  ;;  %vm201_vm4 = vweird.f32 %v195_v40 }
 0x1c7   :  { %v208_v48 = vor.u32 1.1754944e-38, %v207_v44  ;;  %vm206_vm7 = vcmp.eq.f32.partialorder %v205_v46, 8.507059e+37 }
 0x1cb   :  { %v251_v41 = vpop.eup %250 }
 0x1cc   :  { %v197_v42 = vmul.f32 %v251_v41, %v195_v40  ;;  %vm202_vm3 = vweird.f32 %v251_v41 }
 0x1cd   :  { %vm203_vm5 = vmor %vm201_vm4, %vm202_vm3 }
 0x1ce   :  { %v198_v43 = vsub.f32 1.0, %v197_v42 }
 0x1d0   :  { %v199_v45 = vmul.f32 %v251_v41, %v198_v43 }
 0x1d2   :  { %v200_v47 = vadd.f32 %v251_v41, %v199_v45 }
 0x1d4   :  { %v204_v49 = vsel %vm203_vm5, %v251_v41, %v200_v47 }
 0x1d5   :  { %v209_v50 = vsel %vm206_vm7, %v208_v48, %v204_v49 }
 0x1d6   :  { %212 = vst.msk [vmem:[#allocation11] sm:$0x1] %vm211_vm6, %v209_v50 }
 0x1d7   :  { %223 = dma.vmem_to_hbm [thread:$0]  %s219_s24, 16, %s221_s6, [#allocation5]  }
 0x1d8   :  { %378 = dma.done.wait [#allocation5], 16  }
 0x1d9   :  { %379 = vsyncadd [#allocation5], 4294967280 }
 0x1da   :  { %228 = vsyncpa [#allocation4], 1 }
 0x1db   :  { %229 = vsyncpa [#allocation7], 1 }
 0x1dc   :  { %230 = vsyncpa [#allocation10], 1 }
 0x1dd   :  { %231 = vsyncpa [#allocation5], 1 }

</bundles_post_ra>
